<compile_context>
chip_gen: v7x
topology: tpu7x:2x2x1
jax: 0.10.0
libtpu: 0.0.40
codegen_flags: <defaults>
</compile_context>

<pallas_src>
import functools
import math
from dataclasses import dataclass
from typing import Optional

import jax
import jax.numpy as jnp
from jax import lax
from jax.experimental import pallas as pl
from jax.experimental.pallas import tpu as pltpu


@dataclass
class ModelArgs:
    dim: int = 32
    n_layers: int = 1
    n_heads: int = 4
    n_kv_heads: Optional[int] = None
    vocab_size: int = -1
    multiple_of: int = 256
    ffn_dim_multiplier: Optional[float] = None
    norm_eps: float = 1e-05
    max_batch_size: int = 2
    max_seq_len: int = 16
    device: str = None


# ----------------------------- Pallas kernels ------------------------------


def _matmul_kernel(x_ref, w_ref, o_ref, acc_ref):
    @pl.when(pl.program_id(2) == 0)
    def _():
        acc_ref[...] = jnp.zeros_like(acc_ref)

    acc_ref[...] += jnp.dot(
        x_ref[...], w_ref[...], preferred_element_type=jnp.float32
    )

    @pl.when(pl.program_id(2) == pl.num_programs(2) - 1)
    def _():
        o_ref[...] = acc_ref[...].astype(o_ref.dtype)


def _pick_tile(dim, pref):
    # Use the preferred tile only if it evenly divides the dim; otherwise take
    # the full dim (satisfies the "(8,128)-divisible OR full-dim" block rule).
    return pref if dim % pref == 0 else dim


def pallas_matmul(x, w, *, tm=256, tn=256, tk=512):
    """x: (M, K), w: (K, N) -> (M, N). Tiled + pipelined when dims allow."""
    M, K = x.shape
    K2, N = w.shape
    assert K == K2
    tm, tn, tk = _pick_tile(M, tm), _pick_tile(N, tn), _pick_tile(K, tk)
    grid = (M // tm, N // tn, K // tk)
    return pl.pallas_call(
        _matmul_kernel,
        out_shape=jax.ShapeDtypeStruct((M, N), x.dtype),
        grid=grid,
        in_specs=[
            pl.BlockSpec((tm, tk), lambda i, j, k: (i, k)),
            pl.BlockSpec((tk, tn), lambda i, j, k: (k, j)),
        ],
        out_specs=pl.BlockSpec((tm, tn), lambda i, j, k: (i, j)),
        scratch_shapes=[pltpu.VMEM((tm, tn), jnp.float32)],
        compiler_params=pltpu.CompilerParams(
            dimension_semantics=("parallel", "parallel", "arbitrary")
        ),
    )(x, w)


def _attention_kernel(q_ref, k_ref, v_ref, o_ref, *, scale, n_rep, head_dim):
    # One batch element per grid step; all heads processed here so K/V are
    # DMA'd once per batch and shared across the query heads of each KV group.
    qb = q_ref[0].astype(jnp.float32) * scale   # (S, H, Hd) — scale q, not scores
    kb = k_ref[0].astype(jnp.float32)           # (T, Hkv, Hd)
    vb = v_ref[0].astype(jnp.float32)           # (T, Hkv, Hd)
    n_heads = qb.shape[1]
    for h in range(n_heads):                    # static unrolled loop
        g = h // n_rep                          # GQA: shared KV head, no repeat_kv
        q = qb[:, h, :]                         # (S, Hd)
        k = kb[:, g, :]                         # (T, Hd)
        v = vb[:, g, :]                         # (T, Hd)
        # contract last dims of q and k directly (no k.T / XLU transpose)
        s = lax.dot_general(
            q, k, (((1,), (1,)), ((), ())), preferred_element_type=jnp.float32
        )                                       # (S, T)
        s = s - jnp.max(s, axis=-1, keepdims=True)
        p = jnp.exp(s)
        inv = pl.reciprocal(jnp.sum(p, axis=-1, keepdims=True), approx=True)
        o = lax.dot_general(
            p, v, (((1,), (0,)), ((), ())), preferred_element_type=jnp.float32
        ) * inv                                 # (S, Hd)
        # write directly into the (S, H*Hd) output slab (ready for wo matmul)
        o_ref[0, :, h * head_dim:(h + 1) * head_dim] = o.astype(o_ref.dtype)


def pallas_attention(q, cache_k, cache_v, kv_len, *, scale, n_rep):
    """q: (B, S, H, Hd); cache_k/v: (maxB, maxS, Hkv, Hd) -> (B, S, H*Hd)."""
    B, S, H, Hd = q.shape
    _, _, Hkv, _ = cache_k.shape
    kernel = functools.partial(
        _attention_kernel, scale=scale, n_rep=n_rep, head_dim=Hd
    )
    return pl.pallas_call(
        kernel,
        out_shape=jax.ShapeDtypeStruct((B, S, H * Hd), q.dtype),
        grid=(B,),
        in_specs=[
            pl.BlockSpec((1, S, H, Hd), lambda b: (b, 0, 0, 0)),
            # read the first kv_len rows straight out of the cache layout
            pl.BlockSpec((1, kv_len, Hkv, Hd), lambda b: (b, 0, 0, 0)),
            pl.BlockSpec((1, kv_len, Hkv, Hd), lambda b: (b, 0, 0, 0)),
        ],
        out_specs=pl.BlockSpec((1, S, H * Hd), lambda b: (b, 0, 0)),
        compiler_params=pltpu.CompilerParams(dimension_semantics=("parallel",)),
    )(q, cache_k, cache_v)


# ------------------------------- JAX glue -----------------------------------


def apply_rotary_embedding(x, freqs_cos, freqs_sin):
    """x: (B, S, H, Hd); freqs_*: (S, Hd//2). Interleaved-pair complex rotate."""
    B, S, H, Hd = x.shape
    xr = x.reshape(B, S, H, Hd // 2, 2)
    x0, x1 = xr[..., 0], xr[..., 1]
    c = freqs_cos[None, :, None, :]
    s = freqs_sin[None, :, None, :]
    o0 = x0 * c - x1 * s
    o1 = x0 * s + x1 * c
    return jnp.stack([o0, o1], axis=-1).reshape(B, S, H, Hd).astype(x.dtype)


def repeat_kv(x, n_rep):
    if n_rep == 1:
        return x
    b, s, h, d = x.shape
    return jnp.broadcast_to(x[:, :, :, None, :], (b, s, h, n_rep, d)).reshape(
        b, s, h * n_rep, d
    )


def precompute_freqs(head_dim, start_pos, seq_len, theta=10000.0):
    inv = 1.0 / (
        theta ** (jnp.arange(0, head_dim, 2, dtype=jnp.float32) / head_dim)
    )
    t = jnp.arange(start_pos, start_pos + seq_len, dtype=jnp.float32)
    freqs = jnp.outer(t, inv)  # (S, Hd/2)
    return jnp.cos(freqs), jnp.sin(freqs)


class SelfAttentionPallas:
    def __init__(self, args: ModelArgs, key):
        self.n_kv_heads = args.n_heads if args.n_kv_heads is None else args.n_kv_heads
        self.n_heads_q = args.n_heads
        self.n_rep = self.n_heads_q // self.n_kv_heads
        self.head_dim = args.dim // args.n_heads
        kq, kk, kv, ko = jax.random.split(key, 4)
        std = 1.0 / math.sqrt(args.dim)
        # PyTorch nn.Linear layout (out_features, in_features) — kept for the reference.
        self.wq = jax.random.normal(kq, (self.n_heads_q * self.head_dim, args.dim), jnp.float32) * std
        self.wk = jax.random.normal(kk, (self.n_kv_heads * self.head_dim, args.dim), jnp.float32) * std
        self.wv = jax.random.normal(kv, (self.n_kv_heads * self.head_dim, args.dim), jnp.float32) * std
        self.wo = jax.random.normal(ko, (args.dim, self.n_heads_q * self.head_dim), jnp.float32) * std
        # Pre-transposed + fused weights (computed ONCE at init).
        self.w_qkv_t = jnp.concatenate([self.wq.T, self.wk.T, self.wv.T], axis=1)
        self.wo_t = self.wo.T
        self.cache_k = jnp.zeros(
            (args.max_batch_size, args.max_seq_len, self.n_kv_heads, self.head_dim),
            jnp.float32,
        )
        self.cache_v = jnp.zeros_like(self.cache_k)

    def __call__(self, x, start_pos, freqs_cos, freqs_sin):
        B, S, D = x.shape
        x2d = x.reshape(B * S, D)
        q_dim = self.n_heads_q * self.head_dim
        kv_dim = self.n_kv_heads * self.head_dim

        # --- fused QKV projection (single Pallas matmul) ---
        qkv = pallas_matmul(x2d, self.w_qkv_t)                    # (B*S, q+2kv)
        xq = qkv[:, :q_dim].reshape(B, S, self.n_heads_q, self.head_dim)
        xk = qkv[:, q_dim:q_dim + kv_dim].reshape(B, S, self.n_kv_heads, self.head_dim)
        xv = qkv[:, q_dim + kv_dim:].reshape(B, S, self.n_kv_heads, self.head_dim)

        # --- RoPE (elementwise JAX glue) ---
        xq = apply_rotary_embedding(xq, freqs_cos, freqs_sin)
        xk = apply_rotary_embedding(xk, freqs_cos, freqs_sin)

        # --- KV cache update ---
        # TODO(synk): fuse the cache write into the kernel via input_output_aliases
        # to avoid copying the whole cache; dynamic_update_slice is kept for clarity.
        self.cache_k = jax.lax.dynamic_update_slice(self.cache_k, xk, (0, start_pos, 0, 0))
        self.cache_v = jax.lax.dynamic_update_slice(self.cache_v, xv, (0, start_pos, 0, 0))
        T = start_pos + S

        # --- attention: one grid step per batch, all heads, KV read from cache ---
        scale = 1.0 / math.sqrt(self.head_dim)
        out2d = pallas_attention(
            xq, self.cache_k, self.cache_v, T, scale=scale, n_rep=self.n_rep
        )                                                          # (B, S, H*Hd)

        # --- output projection (Pallas matmul, weight pre-transposed) ---
        return pallas_matmul(out2d.reshape(B * S, -1), self.wo_t).reshape(B, S, -1)


# --------------------------- pure-JAX reference ------------------------------


def reference_forward(wq, wk, wv, wo, cache_k0, cache_v0, x, start_pos,
                      freqs_cos, freqs_sin, n_heads, n_kv_heads, head_dim):
    B, S, D = x.shape
    n_rep = n_heads // n_kv_heads
    xq = (x.reshape(B * S, D) @ wq.T).reshape(B, S, n_heads, head_dim)
    xk = (x.reshape(B * S, D) @ wk.T).reshape(B, S, n_kv_heads, head_dim)
    xv = (x.reshape(B * S, D) @ wv.T).reshape(B, S, n_kv_heads, head_dim)
    xq = apply_rotary_embedding(xq, freqs_cos, freqs_sin)
    xk = apply_rotary_embedding(xk, freqs_cos, freqs_sin)
    cache_k = jax.lax.dynamic_update_slice(cache_k0, xk, (0, start_pos, 0, 0))
    cache_v = jax.lax.dynamic_update_slice(cache_v0, xv, (0, start_pos, 0, 0))
    T = start_pos + S
    keys = repeat_kv(cache_k[:B, :T], n_rep)
    values = repeat_kv(cache_v[:B, :T], n_rep)
    q = jnp.transpose(xq, (0, 2, 1, 3))
    k = jnp.transpose(keys, (0, 2, 1, 3))
    v = jnp.transpose(values, (0, 2, 1, 3))
    scores = jnp.einsum("bhqd,bhkd->bhqk", q, k) / math.sqrt(head_dim)
    scores = jax.nn.softmax(scores.astype(jnp.float32), axis=-1)
    out = jnp.einsum("bhqk,bhkd->bhqd", scores, v)
    out = jnp.transpose(out, (0, 2, 1, 3)).reshape(B, S, -1)
    return out @ wo.T


# --------------------------------- main --------------------------------------

if __name__ == "__main__":
    configs = [
        ("MHA", ModelArgs(dim=32, n_heads=4, n_kv_heads=None,
                          max_batch_size=2, max_seq_len=16)),
        ("GQA", ModelArgs(dim=32, n_heads=4, n_kv_heads=2,
                          max_batch_size=2, max_seq_len=16)),
    ]
    B, S, start_pos = 2, 8, 4

    for name, args in configs:
        key = jax.random.PRNGKey(0)
        k_params, k_x = jax.random.split(key)

        attn = SelfAttentionPallas(args, k_params)
        x = jax.random.normal(k_x, (B, S, args.dim), jnp.float32)
        freqs_cos, freqs_sin = precompute_freqs(attn.head_dim, start_pos, S)

        cache_k0 = jnp.zeros_like(attn.cache_k)
        cache_v0 = jnp.zeros_like(attn.cache_v)

        out = jax.block_until_ready(attn(x, start_pos, freqs_cos, freqs_sin))
        ref = jax.block_until_ready(reference_forward(
            attn.wq, attn.wk, attn.wv, attn.wo, cache_k0, cache_v0,
            x, start_pos, freqs_cos, freqs_sin,
            attn.n_heads_q, attn.n_kv_heads, attn.head_dim,
        ))

        assert out.shape == (B, S, args.dim)
        err = float(jnp.max(jnp.abs(out - ref)))
        # tolerance accounts for the EUP approximate reciprocal in the softmax
        assert err < 5e-3, f"{name}: max abs err {err}"

    print("KERNEL_OK")
</pallas_src>

<mosaic_0001>
module attributes {stable_mosaic.version = 11 : i64} {
  func.func @_matmul_kernel(%arg0: i32, %arg1: i32, %arg2: i32, %arg3: memref<16x32xf32, #tpu.memory_space<vmem>>, %arg4: memref<32x96xf32, #tpu.memory_space<vmem>>, %arg5: memref<16x96xf32, #tpu.memory_space<vmem>>, %arg6: memref<16x96xf32, #tpu.memory_space<vmem>>) attributes {dimension_semantics = [#tpu.dimension_semantics<parallel>, #tpu.dimension_semantics<parallel>, #tpu.dimension_semantics<arbitrary>], iteration_bounds = array<i64: 1, 1, 1>, scalar_prefetch = 0 : i64, scratch_operands = 1 : i64, tpu.core_type = #tpu.core_type<tc>, window_params = [{transform_indices = @transform_0, window_bounds = array<i64: 16, 32>}, {transform_indices = @transform_1, window_bounds = array<i64: 32, 96>}, {transform_indices = @transform_2, window_bounds = array<i64: 16, 96>}]} {
    %c0_i32 = arith.constant 0 : i32
    %0 = arith.cmpi eq, %arg2, %c0_i32 : i32
    %1 = arith.extui %0 : i1 to i32
    %c0_i32_0 = arith.constant 0 : i32
    %2 = arith.cmpi ne, %1, %c0_i32_0 : i32
    scf.if %2 {
      %cst_10 = arith.constant 0.000000e+00 : f32
      %12 = vector.broadcast %cst_10 : f32 to vector<16x96xf32>
      %c0_11 = arith.constant 0 : index
      %c0_12 = arith.constant 0 : index
      %13 = vector.load %arg6[%c0_11, %c0_12] : memref<16x96xf32, #tpu.memory_space<vmem>>, vector<16x96xf32>
      tpu.vector_store %arg6[%c0_11, %c0_12], %12 {strides = array<i32>} : memref<16x96xf32, #tpu.memory_space<vmem>>, vector<16x96xf32>,
    } else {
    }
    %c0 = arith.constant 0 : index
    %c0_1 = arith.constant 0 : index
    %3 = vector.load %arg6[%c0, %c0_1] : memref<16x96xf32, #tpu.memory_space<vmem>>, vector<16x96xf32>
    %c0_2 = arith.constant 0 : index
    %c0_3 = arith.constant 0 : index
    %4 = vector.load %arg3[%c0_2, %c0_3] : memref<16x32xf32, #tpu.memory_space<vmem>>, vector<16x32xf32>
    %c0_4 = arith.constant 0 : index
    %c0_5 = arith.constant 0 : index
    %5 = vector.load %arg4[%c0_4, %c0_5] : memref<32x96xf32, #tpu.memory_space<vmem>>, vector<32x96xf32>
    %cst = arith.constant dense<0.000000e+00> : vector<16x96xf32>
    %6 = tpu.matmul %4, %5, %cst {dimension_numbers = #tpu.dot_dimension_numbers<[1], [0], [0], [1], [0, 0, 1, 1], [], []>} : vector<16x32xf32>, vector<32x96xf32>, vector<16x96xf32> -> vector<16x96xf32>
    %7 = arith.addf %3, %6 : vector<16x96xf32>
    %c0_6 = arith.constant 0 : index
    %c0_7 = arith.constant 0 : index
    %8 = vector.load %arg6[%c0_6, %c0_7] : memref<16x96xf32, #tpu.memory_space<vmem>>, vector<16x96xf32>
    tpu.vector_store %arg6[%c0_6, %c0_7], %7 {strides = array<i32>} : memref<16x96xf32, #tpu.memory_space<vmem>>, vector<16x96xf32>,
    %c0_i32_8 = arith.constant 0 : i32
    %9 = arith.cmpi eq, %arg2, %c0_i32_8 : i32
    %10 = arith.extui %9 : i1 to i32
    %c0_i32_9 = arith.constant 0 : i32
    %11 = arith.cmpi ne, %10, %c0_i32_9 : i32
    scf.if %11 {
      %c0_10 = arith.constant 0 : index
      %c0_11 = arith.constant 0 : index
      %12 = vector.load %arg6[%c0_10, %c0_11] : memref<16x96xf32, #tpu.memory_space<vmem>>, vector<16x96xf32>
      %c0_12 = arith.constant 0 : index
      %c0_13 = arith.constant 0 : index
      %13 = vector.load %arg5[%c0_12, %c0_13] : memref<16x96xf32, #tpu.memory_space<vmem>>, vector<16x96xf32>
      tpu.vector_store %arg5[%c0_12, %c0_13], %12 {strides = array<i32>} : memref<16x96xf32, #tpu.memory_space<vmem>>, vector<16x96xf32>,
    } else {
    }
    return
  }
  func.func @transform_0(%arg0: i32, %arg1: i32, %arg2: i32) -> (i32, i32) {
    %c0_i32 = arith.constant 0 : i32
    return %arg0, %arg2 : i32, i32
  }
  func.func @transform_1(%arg0: i32, %arg1: i32, %arg2: i32) -> (i32, i32) {
    %c0_i32 = arith.constant 0 : i32
    return %arg2, %arg1 : i32, i32
  }
  func.func @transform_2(%arg0: i32, %arg1: i32, %arg2: i32) -> (i32, i32) {
    %c0_i32 = arith.constant 0 : i32
    return %arg0, %arg1 : i32, i32
  }
}

</mosaic_0001>

<bundles_post_ra>
// kernel: tpu_custom_call.1
= control target key start
LH: loop header
LB: loop body
LE: loop exit
PB: predicated region body
PF: predicated region fallthrough
CT: control target
= control target key end

     0   :  { %7 = vsyncpa [#allocation4], 0  ;;  %s344_s0 = inlined_call_operand.hbm [shape: f32[16,32], index: 0, kind: input, shape index: {}]   ;;  %s345_s1 = inlined_call_operand.hbm [shape: f32[32,96], index: 1, kind: input, shape index: {}]   ;;  %s346_s2 = inlined_call_operand.hbm [shape: f32[16,96], index: 2, kind: output, shape index: {}]  }
   0x1   :  { %8 = vsyncpa [#allocation7], 0 }
   0x2   :  { %9 = vsyncpa [#allocation5], 0  ;;  %s272_s9 = smov [#allocation3]   ;;  %s200_s13 = scalar_lea.hbm %s344_s0, 256 }
   0x3   :  { %s15_s10 = sshll.u32 %s272_s9, 4  ;;  %p201_p0 = scmp.ne.s32.totalorder %s344_s0, %s200_s13  ;;  %s16_s10 = int_to_ptr.vmem [resolvable:$true] %s15_s10 }
   0x4   :  { %p204_p1 = scmp.lt.u32.totalorder %s200_s13, %s344_s0 }
   0x6   :  { %p206_p2 = pnand %p204_p1, %p201_p0 }
   0x8   :  { %209 = shalt.err (!%p206_p2)
}
   0x9   :  { %s210_s18 = scalar_lea.vmem %s16_s10, 256  ;;  %p215_p4 = scmp.lt.s32.totalorder %s16_s10, %s16_s10 }
   0xa   :  { %p211_p3 = scmp.ne.s32.totalorder %s16_s10, %s210_s18  ;;  %p216_p5 = scmp.lt.s32.totalorder %s210_s18, %s210_s18 }
   0xc   :  { %p217_p6 = por %p216_p5, %p215_p4 }
   0xe   :  { %p218_p7 = pnand %p217_p6, %p211_p3 }
  0x10   :  { %221 = shalt.err (!%p218_p7)
}
  0x11   :  { %s273_s19 = smov 128   ;;  %s274_s20 = smov 8  }
  0x12   :  { %21 = dma.hbm_to_vmem [thread:$0]  %s344_s0, 256, %s16_s10, [#allocation4], %s273_s19, %s273_s19, %s274_s20  }
  0x13   :  { %s275_s23 = smov [#allocation6]   ;;  %s222_s27 = scalar_lea.hbm %s345_s1, 512 }
  0x14   :  { %s27_s24 = sshll.u32 %s275_s23, 4  ;;  %p223_p8 = scmp.ne.s32.totalorder %s345_s1, %s222_s27  ;;  %s28_s24 = int_to_ptr.vmem [resolvable:$true] %s27_s24 }
  0x15   :  { %p226_p9 = scmp.lt.u32.totalorder %s222_s27, %s345_s1 }
  0x17   :  { %p228_p10 = pnand %p226_p9, %p223_p8 }
  0x19   :  { %231 = shalt.err (!%p228_p10)
}
  0x1a   :  { %s232_s4 = scalar_lea.vmem %s28_s24, 512  ;;  %p237_p12 = scmp.lt.s32.totalorder %s28_s24, %s28_s24 }
  0x1b   :  { %p233_p11 = scmp.ne.s32.totalorder %s28_s24, %s232_s4  ;;  %p238_p13 = scmp.lt.s32.totalorder %s232_s4, %s232_s4 }
  0x1d   :  { %p239_p0 = por %p238_p13, %p237_p12 }
  0x1f   :  { %p240_p1 = pnand %p239_p0, %p233_p11 }
  0x21   :  { %243 = shalt.err (!%p240_p1)
}
  0x22   :  { %33 = dma.hbm_to_vmem [thread:$0]  %s345_s1, 512, %s28_s24, [#allocation7], %s273_s19, %s273_s19, %s274_s20  }
  0x23   :  { %266 = dma.done.wait [#allocation4], 256  }
  0x24   :  { %267 = vsyncadd [#allocation4], 4294967040 }
  0x25   :  { %268 = dma.done.wait [#allocation7], 512  }
  0x26   :  { %269 = vsyncadd [#allocation7], 4294966784  ;;  %vm44_vm0 = vcmask 785408   ;;  %v276_v0 = vmov 0.0   ;;  %vm55_vm1 = vcmask 261120   ;;  %v51_v1 = vld [vmem:[#allocation6] sm:$0xff] }
  0x27   :  { %46 = vst.msk [vmem:[#allocation2 + $0x8] sm:$0xff] %vm44_vm0, %v276_v0  ;;  %45 = vst.msk [vmem:[#allocation2] sm:$0xff] %vm44_vm0, %v276_v0  ;;  %v52_v2 = vld [vmem:[#allocation6 + $0x8] sm:$0xff]  ;;  %v53_v3 = vld [vmem:[#allocation6 + $0x10] sm:$0xff]  ;;  %s277_s1 = smov [#allocation8]  }
  0x28   :  { %v186_v4 = vpack.c.bf16 %v52_v2, %v51_v1  ;;  %v54_v5 = vld [vmem:[#allocation6 + $0x18] sm:$0xff]  ;;  %v49_v6 = vld [vmem:[#allocation3] sm:$0xff]  ;;  %s154_s6 = sshll.u32 %s277_s1, 4  ;;  %s155_s6 = int_to_ptr.vmem [resolvable:$true] %s154_s6 }
  0x29   :  { %v190_v7 = vpack.c.bf16 %v54_v5, %v53_v3  ;;  %183 = vmatprep.mubr.msk.f32.mxu0 %vm55_vm1, %v49_v6  ;;  %v50_v8 = vld [vmem:[#allocation3 + $0x8] sm:$0xff]  ;;  %s244_s7 = scalar_lea.vmem %s155_s6, 256  ;;  %p249_p3 = scmp.lt.s32.totalorder %s155_s6, %s155_s6 }
  0x2a   :  { %187 = vmatprep.subr.bf16.mxu0 %v186_v4  ;;  %p245_p2 = scmp.ne.s32.totalorder %s155_s6, %s244_s7  ;;  %p250_p4 = scmp.lt.s32.totalorder %s244_s7, %s244_s7 }
  0x2b   :  { %189 = vmatpush3.bf16.msra.mxu0 %v186_v4 }
  0x2c   :  { %191 = vmatprep.subr.bf16.mxu0 %v190_v7  ;;  %p251_p5 = por %p250_p4, %p249_p3 }
  0x2e   :  { %v48_v9 = vld [vmem:[#allocation2 + $0x8] sm:$0xff]  ;;  %v47_v10 = vld [vmem:[#allocation2] sm:$0xff]  ;;  %p252_p6 = pnand %p251_p5, %p245_p2 }
  0x2f   :  { %193 = vmatpush3.bf16.msra.mxu0 %v190_v7 }
  0x32   :  { %184 = vmatmul.mubr.msk.f32.vlgmr.msra.gmra.mrb[0].mxu0 %vm55_vm1, %v50_v8 }
 0x105   :  { %v185_v11 = vpop.f32.mrb[0].mxu0 }
 0x106   :  { %v138_v12 = vadd.f32 %v185_v11, %v48_v9  ;;  %v128_v13 = vpop.f32.mrb[1].mxu0 }
 0x107   :  { %v137_v14 = vadd.f32 %v128_v13, %v47_v10 }
 0x108   :  { %141 = vst.msk [vmem:[#allocation2 + $0x8] sm:$0xff] %vm44_vm0, %v138_v12 }
 0x109   :  { %140 = vst.msk [vmem:[#allocation2] sm:$0xff] %vm44_vm0, %v137_v14 }
 0x10f   :  { %v146_v15 = vld [vmem:[#allocation2 + $0x8] sm:$0xff] }
 0x110   :  { %v145_v16 = vld [vmem:[#allocation2] sm:$0xff]  ;;  %148 = vst.msk [vmem:[#allocation8 + $0x8] sm:$0xff] %vm44_vm0, %v146_v15 }
 0x111   :  { %147 = vst.msk [vmem:[#allocation8] sm:$0xff] %vm44_vm0, %v145_v16 }
 0x112   :  { %255 = shalt.err (!%p252_p6)
}
 0x113   :  { %s256_s10 = scalar_lea.hbm %s346_s2, 256 }
 0x114   :  { %p257_p7 = scmp.ne.s32.totalorder %s346_s2, %s256_s10  ;;  %p260_p8 = scmp.lt.u32.totalorder %s256_s10, %s346_s2 }
 0x116   :  { %p262_p9 = pnand %p260_p8, %p257_p7 }
 0x118   :  { %265 = shalt.err (!%p262_p9)
}
 0x119   :  { %160 = dma.vmem_to_hbm [thread:$0]  %s155_s6, 256, %s346_s2, [#allocation5], %s273_s19, %s273_s19, %s274_s20  }
 0x11a   :  { %270 = dma.done.wait [#allocation5], 256  }
 0x11b   :  { %271 = vsyncadd [#allocation5], 4294967040 }
 0x11c   :  { %164 = vsyncpa [#allocation4], 1 }
 0x11d   :  { %165 = vsyncpa [#allocation7], 1 }
 0x11e   :  { %166 = vsyncpa [#allocation5], 1 }

</bundles_post_ra>
